<compile_context>
chip_gen: v7x
topology: tpu7x:2x2x1
jax: 0.10.0
libtpu: 0.0.40
codegen_flags: <defaults>
</compile_context>

<pallas_src>
import jax
import jax.numpy as jnp
from jax.experimental import pallas as pl
from jax.experimental.pallas import tpu as pltpu


def _transition_kernel(params_ref, w_ref, x_ref, o_ref):
    # params_ref : (2, 2*Cin) f32   row 0 = folded BN scale, row 1 = folded BN
    #                               shift, tiled for the lane-packed
    #                               (even-w | odd-w) channel layout
    # w_ref      : (Cin, Cout)      1x1 conv weight * 0.25 (pool folded)
    # x_ref      : (1, TH, W//2, 2*Cin)  lane-packed NHWC tile
    # o_ref      : (1, TH//2, W//2, Cout)
    _, th, wh, c2 = x_ref.shape
    cin = c2 // 2
    cout = w_ref.shape[1]

    xb = x_ref[0].astype(jnp.float32)                        # (th, wh, 2*cin)
    params = params_ref[...].astype(jnp.float32)             # (2, 2*cin)
    scale = params[0:1]                                       # (1, 2*cin)
    shift = params[1:2]

    # BatchNorm (pre-folded scale/shift) + ReLU  -- VPU, f32
    y = jnp.maximum(xb * scale + shift, 0.0)

    # Horizontal (W) pool: partners live in the two lane halves -> contiguous
    # lane-slice add, no strided access.
    pw = y[:, :, :cin] + y[:, :, cin:]                        # (th, wh, cin)

    # Vertical (H) pool: partners are adjacent rows along the *major* axis;
    # the reshape touches only leading dims (last two dims untouched), so
    # there is no sublane/lane relayout.
    pw = pw.reshape(th // 2, 2, wh, cin)
    ph = pw[:, 0] + pw[:, 1]                                  # (th//2, wh, cin)

    # 1x1 convolution == channel matmul on the MXU (0.25 already in w).
    acts = ph.reshape((th // 2) * wh, cin).astype(w_ref.dtype)
    z = jnp.dot(acts, w_ref[...], preferred_element_type=jnp.float32)
    o_ref[0] = z.reshape(th // 2, wh, cout).astype(o_ref.dtype)


def _pick_row_tile(H, W, Cin, budget_bytes=2 << 20):
    """Largest even divisor of H whose f32 working tile fits the budget.

    ~2 MiB of f32 working set per input tile keeps (double-buffered DMA +
    f32 temporaries + output buffers) comfortably under the default
    scoped-VMEM limit on every TPU generation (16 MiB on v5e, 32 MiB on
    v6e/v7x) while amortizing the per-grid-step overhead."""
    best = 2
    for th in range(2, H + 1, 2):
        if H % th == 0 and th * W * Cin * 4 <= budget_bytes:
            best = th
    return best


def transition_layer_nhwc(x_nhwc, gamma, beta, conv_weight, *, eps=1e-5,
                          row_tile=None):
    """Fast path: NHWC in, NHWC out — no layout transposes anywhere."""
    N, H, W, Cin = x_nhwc.shape
    Cout = conv_weight.shape[0]
    assert H % 2 == 0 and W % 2 == 0, "AvgPool2d(2,2) path requires even H, W"
    dtype = x_nhwc.dtype

    # --- training-mode BatchNorm statistics, single fused pass over x ---
    xf = x_nhwc.astype(jnp.float32)
    mean = jnp.mean(xf, axis=(0, 1, 2))
    mean_sq = jnp.mean(xf * xf, axis=(0, 1, 2))
    var = jnp.maximum(mean_sq - mean * mean, 0.0)             # biased variance
    scale = gamma.astype(jnp.float32) * jax.lax.rsqrt(var + eps)
    shift = beta.astype(jnp.float32) - mean * scale

    # 1x1 conv weight as a matmul, with the 2x2 avg-pool scale folded in.
    w = jnp.transpose(conv_weight.reshape(Cout, Cin), (1, 0))
    w = (w.astype(jnp.float32) * 0.25).astype(dtype)

    # Pack the two horizontal pool partners onto the lane axis:
    # (N, H, W, Cin) -> (N, H, W//2, 2*Cin) is a free, contiguous reshape.
    xr = x_nhwc.reshape(N, H, W // 2, 2 * Cin)

    # Fused BN params, tiled for the lane-packed channel layout.
    params = jnp.stack([jnp.tile(scale, 2), jnp.tile(shift, 2)], axis=0)

    th = row_tile if row_tile is not None else _pick_row_tile(H, W, Cin)
    assert H % th == 0 and th % 2 == 0

    out_nhwc = pl.pallas_call(
        _transition_kernel,
        out_shape=jax.ShapeDtypeStruct((N, H // 2, W // 2, Cout), dtype),
        grid_spec=pltpu.PrefetchScalarGridSpec(
            num_scalar_prefetch=0,
            grid=(N, H // th),
            in_specs=[
                pl.BlockSpec((2, 2 * Cin), lambda n, g: (0, 0)),        # BN params
                pl.BlockSpec((Cin, Cout), lambda n, g: (0, 0)),         # weight
                pl.BlockSpec((1, th, W // 2, 2 * Cin),
                             lambda n, g: (n, g, 0, 0)),                # x tile
            ],
            out_specs=pl.BlockSpec((1, th // 2, W // 2, Cout),
                                   lambda n, g: (n, g, 0, 0)),
        ),
        compiler_params=pltpu.CompilerParams(
            dimension_semantics=("parallel", "parallel")),
    )(params, w, xr)
    return out_nhwc


def transition_layer(x_nchw, gamma, beta, conv_weight, *, eps=1e-5,
                     row_tile=None):
    """PyTorch-layout adapter: NCHW in, NCHW out (matches nn.Module forward).

    The only extra HBM traffic vs. the NHWC fast path is the input transpose
    (and the 8x-smaller output transpose); an NHWC end-to-end network should
    call `transition_layer_nhwc` directly and pay neither."""
    x_nhwc = jnp.transpose(x_nchw, (0, 2, 3, 1))
    out_nhwc = transition_layer_nhwc(x_nhwc, gamma, beta, conv_weight,
                                     eps=eps, row_tile=row_tile)
    return jnp.transpose(out_nhwc, (0, 3, 1, 2))


def _reference(x_nchw, gamma, beta, conv_weight, eps=1e-5):
    """Pure-JAX reference mirroring the PyTorch forward (training-mode BN)."""
    mean = jnp.mean(x_nchw, axis=(0, 2, 3), keepdims=True)
    var = jnp.mean((x_nchw - mean) ** 2, axis=(0, 2, 3), keepdims=True)
    y = (x_nchw - mean) / jnp.sqrt(var + eps)
    y = y * gamma.reshape(1, -1, 1, 1) + beta.reshape(1, -1, 1, 1)
    y = jnp.maximum(y, 0.0)
    y = jax.lax.conv_general_dilated(y, conv_weight, window_strides=(1, 1),
                                     padding="VALID")
    y = jax.lax.reduce_window(y, 0.0, jax.lax.add,
                              window_dimensions=(1, 1, 2, 2),
                              window_strides=(1, 1, 2, 2),
                              padding="VALID") / 4.0
    return y


if __name__ == "__main__":
    # Small, DenseNet-transition-like shapes: halve the channel count.
    N, Cin, Cout, H, W = 2, 4, 2, 16, 16

    key = jax.random.PRNGKey(0)
    k_x, k_w, k_g, k_b = jax.random.split(key, 4)

    x = jax.random.normal(k_x, (N, Cin, H, W), dtype=jnp.float32)
    conv_weight = jax.random.normal(k_w, (Cout, Cin, 1, 1), dtype=jnp.float32) * 0.5
    gamma = 1.0 + 0.1 * jax.random.normal(k_g, (Cin,), dtype=jnp.float32)
    beta = 0.1 * jax.random.normal(k_b, (Cin,), dtype=jnp.float32)

    fwd = jax.jit(transition_layer)

    # ---- f32 path (matches PyTorch defaults) ----
    out = jax.block_until_ready(fwd(x, gamma, beta, conv_weight))
    ref = _reference(x, gamma, beta, conv_weight)
    assert out.shape == (N, Cout, H // 2, W // 2), out.shape
    assert jnp.allclose(out, ref, atol=1e-3, rtol=1e-3), \
        f"max abs err {jnp.max(jnp.abs(out - ref))}"

    # ---- bf16 path: native-dtype DMA + bf16 MXU operands, f32 accumulation ----
    x_bf = x.astype(jnp.bfloat16)
    out_bf = jax.block_until_ready(fwd(x_bf, gamma, beta, conv_weight))
    ref_bf = _reference(x_bf.astype(jnp.float32), gamma, beta, conv_weight)
    assert out_bf.dtype == jnp.bfloat16
    # Loose tolerance: bf16 rounding of the matmul operands.
    assert jnp.allclose(out_bf.astype(jnp.float32), ref_bf, atol=1e-1, rtol=1e-1), \
        f"bf16 max abs err {jnp.max(jnp.abs(out_bf.astype(jnp.float32) - ref_bf))}"

    print("KERNEL_OK")
</pallas_src>

<mosaic_0001>
module attributes {stable_mosaic.version = 11 : i64} {
  func.func @_transition_kernel(%arg0: i32, %arg1: i32, %arg2: memref<2x8xf32, #tpu.memory_space<vmem>>, %arg3: memref<4x2xf32, #tpu.memory_space<vmem>>, %arg4: memref<1x16x8x8xf32, #tpu.memory_space<vmem>>, %arg5: memref<1x8x8x2xf32, #tpu.memory_space<vmem>>) attributes {dimension_semantics = [#tpu.dimension_semantics<parallel>, #tpu.dimension_semantics<parallel>], iteration_bounds = array<i64: 2, 1>, scalar_prefetch = 0 : i64, scratch_operands = 0 : i64, tpu.core_type = #tpu.core_type<tc>, window_params = [{pipeline_mode = #tpu.pipeline_mode<synchronous>, transform_indices = @transform_0, window_bounds = array<i64: 2, 8>}, {pipeline_mode = #tpu.pipeline_mode<synchronous>, transform_indices = @transform_1, window_bounds = array<i64: 4, 2>}, {transform_indices = @transform_2, window_bounds = array<i64: 1, 16, 8, 8>}, {transform_indices = @transform_3, window_bounds = array<i64: 1, 8, 8, 2>}]} {
    %c0 = arith.constant 0 : index
    %c0_0 = arith.constant 0 : index
    %c0_1 = arith.constant 0 : index
    %c0_2 = arith.constant 0 : index
    %0 = vector.load %arg4[%c0, %c0_0, %c0_1, %c0_2] : memref<1x16x8x8xf32, #tpu.memory_space<vmem>>, vector<1x16x8x8xf32>
    %1 = vector.shape_cast %0 : vector<1x16x8x8xf32> to vector<16x8x8xf32>
    %c0_3 = arith.constant 0 : index
    %c0_4 = arith.constant 0 : index
    %2 = vector.load %arg2[%c0_3, %c0_4] : memref<2x8xf32, #tpu.memory_space<vmem>>, vector<2x8xf32>
    %3 = vector.extract_strided_slice %2 {offsets = [0, 0], sizes = [1, 8], strides = [1, 1]} : vector<2x8xf32> to vector<1x8xf32>
    %4 = vector.extract_strided_slice %2 {offsets = [1, 0], sizes = [1, 8], strides = [1, 1]} : vector<2x8xf32> to vector<1x8xf32>
    %5 = vector.shape_cast %3 : vector<1x8xf32> to vector<1x1x8xf32>
    %6 = vector.broadcast %5 : vector<1x1x8xf32> to vector<16x8x8xf32>
    %7 = arith.mulf %1, %6 : vector<16x8x8xf32>
    %8 = vector.shape_cast %4 : vector<1x8xf32> to vector<1x1x8xf32>
    %9 = vector.broadcast %8 : vector<1x1x8xf32> to vector<16x8x8xf32>
    %10 = arith.addf %7, %9 : vector<16x8x8xf32>
    %cst = arith.constant 0.000000e+00 : f32
    %11 = vector.broadcast %cst : f32 to vector<16x8x8xf32>
    %12 = arith.maximumf %10, %11 : vector<16x8x8xf32>
    %13 = vector.extract_strided_slice %12 {offsets = [0, 0, 0], sizes = [16, 8, 4], strides = [1, 1, 1]} : vector<16x8x8xf32> to vector<16x8x4xf32>
    %14 = vector.extract_strided_slice %12 {offsets = [0, 0, 4], sizes = [16, 8, 4], strides = [1, 1, 1]} : vector<16x8x8xf32> to vector<16x8x4xf32>
    %15 = arith.addf %13, %14 : vector<16x8x4xf32>
    %16 = vector.shape_cast %15 : vector<16x8x4xf32> to vector<8x2x8x4xf32>
    %17 = vector.extract_strided_slice %16 {offsets = [0, 0, 0, 0], sizes = [8, 1, 8, 4], strides = [1, 1, 1, 1]} : vector<8x2x8x4xf32> to vector<8x1x8x4xf32>
    %18 = vector.shape_cast %17 : vector<8x1x8x4xf32> to vector<8x8x4xf32>
    %19 = vector.extract_strided_slice %16 {offsets = [0, 1, 0, 0], sizes = [8, 1, 8, 4], strides = [1, 1, 1, 1]} : vector<8x2x8x4xf32> to vector<8x1x8x4xf32>
    %20 = vector.shape_cast %19 : vector<8x1x8x4xf32> to vector<8x8x4xf32>
    %21 = arith.addf %18, %20 : vector<8x8x4xf32>
    %22 = vector.shape_cast %21 : vector<8x8x4xf32> to vector<64x4xf32>
    %c0_5 = arith.constant 0 : index
    %c0_6 = arith.constant 0 : index
    %23 = vector.load %arg3[%c0_5, %c0_6] : memref<4x2xf32, #tpu.memory_space<vmem>>, vector<4x2xf32>
    %cst_7 = arith.constant dense<0.000000e+00> : vector<64x2xf32>
    %24 = tpu.matmul %22, %23, %cst_7 {dimension_numbers = #tpu.dot_dimension_numbers<[1], [0], [0], [1], [0, 0, 1, 1], [], []>} : vector<64x4xf32>, vector<4x2xf32>, vector<64x2xf32> -> vector<64x2xf32>
    %25 = vector.shape_cast %24 : vector<64x2xf32> to vector<8x8x2xf32>
    %c0_8 = arith.constant 0 : index
    %c0_9 = arith.constant 0 : index
    %c0_10 = arith.constant 0 : index
    %c0_11 = arith.constant 0 : index
    %26 = vector.load %arg5[%c0_8, %c0_9, %c0_10, %c0_11] : memref<1x8x8x2xf32, #tpu.memory_space<vmem>>, vector<1x8x8x2xf32>
    %27 = vector.shape_cast %26 : vector<1x8x8x2xf32> to vector<8x8x2xf32>
    %28 = vector.shape_cast %25 : vector<8x8x2xf32> to vector<1x8x8x2xf32>
    tpu.vector_store %arg5[%c0_8, %c0_9, %c0_10, %c0_11], %28 {strides = array<i32>} : memref<1x8x8x2xf32, #tpu.memory_space<vmem>>, vector<1x8x8x2xf32>,
    return
  }
  func.func @transform_0(%arg0: i32, %arg1: i32) -> (i32, i32) {
    %c0_i32 = arith.constant 0 : i32
    %c0_i32_0 = arith.constant 0 : i32
    %c0_i32_1 = arith.constant 0 : i32
    return %c0_i32, %c0_i32_0 : i32, i32
  }
  func.func @transform_1(%arg0: i32, %arg1: i32) -> (i32, i32) {
    %c0_i32 = arith.constant 0 : i32
    %c0_i32_0 = arith.constant 0 : i32
    %c0_i32_1 = arith.constant 0 : i32
    return %c0_i32, %c0_i32_0 : i32, i32
  }
  func.func @transform_2(%arg0: i32, %arg1: i32) -> (i32, i32, i32, i32) {
    %c0_i32 = arith.constant 0 : i32
    %c0_i32_0 = arith.constant 0 : i32
    %c0_i32_1 = arith.constant 0 : i32
    return %arg0, %arg1, %c0_i32, %c0_i32_0 : i32, i32, i32, i32
  }
  func.func @transform_3(%arg0: i32, %arg1: i32) -> (i32, i32, i32, i32) {
    %c0_i32 = arith.constant 0 : i32
    %c0_i32_0 = arith.constant 0 : i32
    %c0_i32_1 = arith.constant 0 : i32
    return %arg0, %arg1, %c0_i32, %c0_i32_0 : i32, i32, i32, i32
  }
}

</mosaic_0001>

<bundles_post_ra>
// kernel: tile.17
= control target key start
LH: loop header
LB: loop body
LE: loop exit
PB: predicated region body
PF: predicated region fallthrough
CT: control target
= control target key end

     0   :  { %s22_s0 = inlined_call_operand.vmem [shape: f32[4], index: 0, kind: input, shape index: {}]   ;;  %s23_s1 = inlined_call_operand.vmem [shape: f32[2,4], index: 1, kind: output, shape index: {}]  }
   0x1   :  { %v4_v0 = vld [vmem:[%s22_s0] ss:$0 sm:$0xff] }
   0x2   :  { %5 = vst [vmem:[%s23_s1] sm:$0x3] %v4_v0 }

// kernel: tile.19
= control target key start
LH: loop header
LB: loop body
LE: loop exit
PB: predicated region body
PF: predicated region fallthrough
CT: control target
= control target key end

     0   :  { %vm7_vm0 = vcmask 31744   ;;  %vm13_vm1 = vcmask 64544   ;;  %s39_s0 = inlined_call_operand.vmem [shape: f32[2,4], index: 0, kind: input, shape index: {}]   ;;  %s40_s1 = inlined_call_operand.vmem [shape: f32[1,8], index: 1, kind: output, shape index: {}]  }
   0x1   :  { %v4_v0 = vld [vmem:[%s39_s0] sm:$0x3]  ;;  %s22_s0 = smov 4  }
   0x2   :  { %5 = vst [vmem:[#allocation1] sm:$0x3] %v4_v0 }
   0x9   :  { %v10_v1 = vld [vmem:[#allocation1 + $0x1] sm:$0x1]   ;;  %v6_v2 = vld [vmem:[#allocation1] sm:$0x1]  }
   0xa   :  { %11 = vrot.lane.b32.xlu0 %v10_v1, %s22_s0  ;;  %8 = vst.msk [vmem:[#allocation0] sm:$0x1] %vm7_vm0, %v6_v2  }
  0x7c   :  { %v12_v3 = vpop.permute.xlu0 %11  }
  0x7d   :  { %14 = vst.msk [vmem:[#allocation0] sm:$0x1] %vm13_vm1, %v12_v3  }
  0x84   :  { %v18_v4 = vld [vmem:[#allocation0] sm:$0x1] }
  0x85   :  { %20 = vst [vmem:[%s40_s1] sm:$0x1] %v18_v4 }

// kernel: transition_layer.1
= control target key start
LH: loop header
LB: loop body
LE: loop exit
PB: predicated region body
PF: predicated region fallthrough
CT: control target
= control target key end

     0   :  { %s719_s12 = smov 0   ;;  %s721_s13 = smov 0   ;;  %s906_s0 = inlined_call_operand.vmem [shape: f32[2,8], index: 0, kind: input, shape index: {}]   ;;  %s907_s1 = inlined_call_operand.vmem [shape: f32[4,2], index: 1, kind: input, shape index: {}]   ;;  %s908_s2 = inlined_call_operand.vmem [shape: f32[2,16,8,8], index: 2, kind: input, shape index: {}]   ;;  %s909_s3 = inlined_call_operand.vmem [shape: f32[2,8,8,2], index: 3, kind: output, shape index: {}]  }
   0x1   :  { %s723_s14 = smov 0  }
   0x2 LB: > { %s25_s15 = sadd.s32 1, %s692_s13  ;;  %p606_p0 = scmp.ge.s32.totalorder %s696_s14, 1  ;;  %s696_s14 = sphi %s723_s14, %s13_s14   ;;  %s692_s13 = sphi %s721_s13, %s911_s13   ;;  %s688_s12 = sphi %s719_s12, %s910_s12  }
   0x3   : > { %p27_p1 = scmp.ge.s32.totalorder %s25_s15, 2  ;;  %p158_p2 = scmp.lt.s32.totalorder %s696_s14, 3 }
   0x5   : > { %s913_s15 = smov (%p27_p1, %s25_s15), 0  ;;  %p159_p3 = pnand %p606_p0, %p158_p2 }
   0x6   : > { %p191_p4 = scmp.lt.s32.totalorder (!%p159_p3), %s688_s12, 1  ;;  %v227_v0 = vlaneseq (!%p159_p3)  ;;  %v226_v2 = vld [vmem:[%s906_s0] sm:$0x3] (!%p159_p3)  ;;  %s698_s22 = smov (!%p159_p3), 124   ;;  %vm397_vm0 = vcmask (!%p159_p3), 1043456   ;;  %vm372_vm1 = vcmask (!%p159_p3), 31744  }
   0x7   : > { %162 = sbr.rel (%p159_p3) target bundleno = 386 (0x182), region = 32  ;;  %v371_v42 = vld [vmem:[%s907_s1] sm:$0xf] (!%p159_p3)  ;;  %vm506_vm2 = vcmask (!%p159_p3), 15360  }
   0x8   : > { %v228_v1 = vshrl.u32 (!%p159_p3), %v227_v0, 7  ;;  %633 = vmatprep.subr.msk.mxu0 (!%p159_p3), %vm397_vm0, %v371_v42  ;;  %647 = vmatprep.subr.msk.mxu1 (!%p159_p3), %vm397_vm0, %v371_v42 }
   0x9   : > { %634 = vmatpush3.msk.msra.mxu0 (!%p159_p3), %vm397_vm0, %v371_v42  ;;  %648 = vmatpush3.msk.msra.mxu1 (!%p159_p3), %vm397_vm0, %v371_v42 }
   0xa   : > { %v229_v3 = vsub.s32 (!%p159_p3), 0, %v228_v1  ;;  %v249_v4 = vsub.s32 (!%p159_p3), 1, %v228_v1 }
   0xc   : > { %v749_v6 = vrot.slane (!%p159_p3), %v226_v2, %v229_v3  ;;  %v751_v7 = vrot.slane (!%p159_p3), %v226_v2, %v249_v4 }
   0xe   : > { %s915_s12 = smov (!%p191_p4, %s688_s12), 1 }
   0xf   : > { %s622_s18 = sshll.u32 %s915_s12, 7  ;;  %s623_s25 = sshll.u32 %s915_s12, 6 }
  0x10   : > { %s746_s21 = scalar_lea.vmem %s908_s2, %s622_s18  ;;  %s208_s28 = scalar_lea.vmem %s909_s3, %s623_s25 }
  0x11   : > { %v218_v5 = vld [vmem:[%s746_s21 + $0x40] sm:$0xff]  ;;  %v219_v9 = vld [vmem:[%s746_s21 + $0x48] sm:$0xff]  ;;  %v213_v11 = vld [vmem:[%s746_s21 + $0x18] sm:$0xff] }
  0x12   : > { %v210_v8 = vld [vmem:[%s746_s21] sm:$0xff]  ;;  %v211_v10 = vld [vmem:[%s746_s21 + $0x8] sm:$0xff]  ;;  %v212_v12 = vld [vmem:[%s746_s21 + $0x10] sm:$0xff]  ;;  %v239_v13 = vmul.f32 %v749_v6, %v218_v5  ;;  %v240_v15 = vmul.f32 %v749_v6, %v219_v9  ;;  %v234_v17 = vmul.f32 %v749_v6, %v213_v11 }
  0x13   : > { %v231_v14 = vmul.f32 %v749_v6, %v210_v8  ;;  %v232_v16 = vmul.f32 %v749_v6, %v211_v10  ;;  %v233_v18 = vmul.f32 %v749_v6, %v212_v12  ;;  %v221_v23 = vld [vmem:[%s746_s21 + $0x58] sm:$0xff]  ;;  %v220_v24 = vld [vmem:[%s746_s21 + $0x50] sm:$0xff]  ;;  %v215_v33 = vld [vmem:[%s746_s21 + $0x28] sm:$0xff] }
  0x14   : > { %v765_v19 = vadd.f32 %v751_v7, %v239_v13  ;;  %v771_v21 = vadd.f32 %v751_v7, %v240_v15  ;;  %v242_v27 = vmul.f32 %v749_v6, %v221_v23  ;;  %v241_v28 = vmul.f32 %v749_v6, %v220_v24  ;;  %v214_v34 = vld [vmem:[%s746_s21 + $0x20] sm:$0xff]  ;;  %v223_v41 = vld [vmem:[%s746_s21 + $0x68] sm:$0xff]  ;;  %v217_v50 = vld [vmem:[%s746_s21 + $0x38] sm:$0xff] }
  0x15   : > { %v768_v20 = vadd.f32 %v751_v7, %v231_v14  ;;  %v774_v22 = vadd.f32 %v751_v7, %v232_v16  ;;  %v791_v31 = vadd.f32 %v751_v7, %v234_v17  ;;  %v794_v32 = vadd.f32 %v751_v7, %v233_v18  ;;  %v222_v43 = vld [vmem:[%s746_s21 + $0x60] sm:$0xff]  ;;  %v216_v51 = vld [vmem:[%s746_s21 + $0x30] sm:$0xff]  ;;  %v225_v58 = vld [vmem:[%s746_s21 + $0x78] sm:$0xff] }
  0x16   : > { %v275_v25 = vmax.f32 %v765_v19, 0.0  ;;  %v276_v29 = vmax.f32 %v771_v21, 0.0  ;;  %v799_v35 = vadd.f32 %v751_v7, %v242_v27  ;;  %v802_v36 = vadd.f32 %v751_v7, %v241_v28  ;;  %v224_v59 = vld [vmem:[%s746_s21 + $0x70] sm:$0xff] }
  0x17   : > { %v267_v26 = vmax.f32 %v768_v20, 0.0  ;;  %v268_v30 = vmax.f32 %v774_v22, 0.0  ;;  %v270_v37 = vmax.f32 %v791_v31, 0.0  ;;  %v269_v38 = vmax.f32 %v794_v32, 0.0 }
  0x18   : > { %315 = vrot.lane.b32.xlu1 %v275_v25, %s698_s22  ;;  %v236_v39 = vmul.f32 %v749_v6, %v215_v33  ;;  %v235_v40 = vmul.f32 %v749_v6, %v214_v34  ;;  %v278_v44 = vmax.f32 %v799_v35, 0.0  ;;  %v244_v45 = vmul.f32 %v749_v6, %v223_v41 }
  0x19   : > { %299 = vrot.lane.b32.xlu0 %v267_v26, %s698_s22  ;;  %v277_v46 = vmax.f32 %v802_v36, 0.0  ;;  %v243_v49 = vmul.f32 %v749_v6, %v222_v43  ;;  %v238_v52 = vmul.f32 %v749_v6, %v217_v50  ;;  %v237_v53 = vmul.f32 %v749_v6, %v216_v51 }
  0x1a   : > { %v829_v47 = vadd.f32 %v751_v7, %v236_v39  ;;  %v832_v48 = vadd.f32 %v751_v7, %v235_v40  ;;  %v264_v56 = vadd.f32 %v751_v7, %v244_v45  ;;  %v246_v60 = vmul.f32 %v749_v6, %v225_v58 }
  0x1b   : > { %v263_v57 = vadd.f32 %v751_v7, %v243_v49  ;;  %v245_v61 = vmul.f32 %v749_v6, %v224_v59  ;;  %v258_v0 = vadd.f32 %v751_v7, %v238_v52  ;;  %v257_v1 = vadd.f32 %v751_v7, %v237_v53 }
  0x1c   : > { %317 = vrot.lane.b32.xlu1 %v276_v29, %s698_s22  ;;  %v272_v54 = vmax.f32 %v829_v47, 0.0  ;;  %v271_v55 = vmax.f32 %v832_v48, 0.0  ;;  %v280_v62 = vmax.f32 %v264_v56, 0.0  ;;  %v266_v4 = vadd.f32 %v751_v7, %v246_v60 }
  0x1d   : > { %301 = vrot.lane.b32.xlu0 %v268_v30, %s698_s22  ;;  %v279_v63 = vmax.f32 %v263_v57, 0.0  ;;  %v274_v2 = vmax.f32 %v258_v0, 0.0  ;;  %v273_v3 = vmax.f32 %v257_v1, 0.0  ;;  %v265_v5 = vadd.f32 %v751_v7, %v245_v61 }
  0x1e   : > { %v282_v6 = vmax.f32 %v266_v4, 0.0 }
  0x1f   : > { %v281_v8 = vmax.f32 %v265_v5, 0.0 }
  0x20   : > { %305 = vrot.lane.b32.xlu1 %v270_v37, %s698_s22 }
  0x21   : > { %303 = vrot.lane.b32.xlu0 %v269_v38, %s698_s22 }
  0x24   : > { %321 = vrot.lane.b32.xlu1 %v278_v44, %s698_s22 }
  0x25   : > { %319 = vrot.lane.b32.xlu0 %v277_v46, %s698_s22 }
  0x28   : > { %309 = vrot.lane.b32.xlu1 %v272_v54, %s698_s22 }
  0x29   : > { %307 = vrot.lane.b32.xlu0 %v271_v55, %s698_s22 }
  0x2c   : > { %325 = vrot.lane.b32.xlu1 %v280_v62, %s698_s22 }
  0x2d   : > { %323 = vrot.lane.b32.xlu0 %v279_v63, %s698_s22 }
  0x30   : > { %313 = vrot.lane.b32.xlu1 %v274_v2, %s698_s22 }
  0x31   : > { %311 = vrot.lane.b32.xlu0 %v273_v3, %s698_s22 }
  0x34   : > { %329 = vrot.lane.b32.xlu1 %v282_v6, %s698_s22 }
  0x35   : > { %327 = vrot.lane.b32.xlu0 %v281_v8, %s698_s22 }
  0x8a   : > { %v316_v9 = vpop.permute.xlu1 %315 }
  0x8b   : > { %v300_v10 = vpop.permute.xlu0 %299  ;;  %v355_v13 = vadd.f32 %v316_v9, %v275_v25 }
  0x8c   : > { %v347_v7 = vadd.f32 %v300_v10, %v267_v26 }
  0x8e   : > { %v318_v11 = vpop.permute.xlu1 %317 }
  0x8f   : > { %v302_v12 = vpop.permute.xlu0 %301  ;;  %v356_v14 = vadd.f32 %v318_v11, %v276_v29 }
  0x90   : > { %v348_v15 = vadd.f32 %v302_v12, %v268_v30 }
  0x91   : > { %v367_v17 = vadd.f32 %v356_v14, %v355_v13 }
  0x92   : > { %v363_v16 = vadd.f32 %v348_v15, %v347_v7  ;;  %v306_v18 = vpop.permute.xlu1 %305 }
  0x93   : > { %v304_v23 = vpop.permute.xlu0 %303  ;;  %v350_v24 = vadd.f32 %v306_v18, %v270_v37  ;;  %641 = vmatprep.mubr.msk.f32.mxu1 %vm372_vm1, %v367_v17 }
  0x94   : > { %v349_v19 = vadd.f32 %v304_v23, %v269_v38  ;;  %635 = vmatprep.mubr.msk.f32.mxu0 %vm372_vm1, %v363_v16 }
  0x96   : > { %v364_v20 = vadd.f32 %v350_v24, %v349_v19  ;;  %v322_v21 = vpop.permute.xlu1 %321 }
  0x97   : > { %v320_v25 = vpop.permute.xlu0 %319  ;;  %v358_v22 = vadd.f32 %v322_v21, %v278_v44 }
  0x98   : > { %v357_v26 = vadd.f32 %v320_v25, %v277_v46  ;;  %636 = vmatmul.mubr.msk.f32.vlgmr.msra.gmra.mrb[0].mxu0 %vm372_vm1, %v364_v20 }
  0x9a   : > { %v368_v27 = vadd.f32 %v358_v22, %v357_v26  ;;  %v310_v28 = vpop.permute.xlu1 %309 }
  0x9b   : > { %v308_v29 = vpop.permute.xlu0 %307  ;;  %v352_v30 = vadd.f32 %v310_v28, %v272_v54 }
  0x9c   : > { %v351_v31 = vadd.f32 %v308_v29, %v271_v55  ;;  %642 = vmatmul.mubr.msk.f32.vlgmr.msra.gmra.mrb[0].mxu1 %vm372_vm1, %v368_v27 }
  0x9e   : > { %v365_v32 = vadd.f32 %v352_v30, %v351_v31  ;;  %v326_v33 = vpop.permute.xlu1 %325 }
  0x9f   : > { %v324_v34 = vpop.permute.xlu0 %323  ;;  %v360_v36 = vadd.f32 %v326_v33, %v280_v62 }
  0xa0   : > { %v359_v37 = vadd.f32 %v324_v34, %v279_v63  ;;  %638 = vmatprep.mubr.msk.f32.mxu0 %vm372_vm1, %v365_v32 }
  0xa2   : > { %v369_v35 = vadd.f32 %v360_v36, %v359_v37  ;;  %v314_v38 = vpop.permute.xlu1 %313 }
  0xa3   : > { %v312_v39 = vpop.permute.xlu0 %311  ;;  %v354_v40 = vadd.f32 %v314_v38, %v274_v2 }
  0xa4   : > { %v353_v41 = vadd.f32 %v312_v39, %v273_v3  ;;  %644 = vmatprep.mubr.msk.f32.mxu1 %vm372_vm1, %v369_v35 }
  0xa6   : > { %v366_v42 = vadd.f32 %v354_v40, %v353_v41  ;;  %v330_v43 = vpop.permute.xlu1 %329 }
  0xa7   : > { %v328_v44 = vpop.permute.xlu0 %327  ;;  %v362_v45 = vadd.f32 %v330_v43, %v282_v6 }
  0xa8   : > { %v361_v46 = vadd.f32 %v328_v44, %v281_v8  ;;  %639 = vmatmul.mubr.msk.f32.gmra.mrb[2].mxu0 %vm372_vm1, %v366_v42 }
  0xaa   : > { %v370_v47 = vadd.f32 %v362_v45, %v361_v46 }
  0xac   : > { %645 = vmatmul.mubr.msk.f32.gmra.mrb[2].mxu1 %vm372_vm1, %v370_v47 }
 0x16b   : > { %v637_v48 = vpop.f32.mrb[0].mxu0 }
 0x16c   : > { %508 = vst.msk [vmem:[%s208_s28 + $0x8] sm:$0xff] %vm506_vm2, %v637_v48  ;;  %v467_v49 = vpop.f32.mrb[1].mxu0 }
 0x16d   : > { %507 = vst.msk [vmem:[%s208_s28] sm:$0xff] %vm506_vm2, %v467_v49 }
 0x16f   : > { %v643_v50 = vpop.f32.mrb[0].mxu1 }
 0x170   : > { %512 = vst.msk [vmem:[%s208_s28 + $0x28] sm:$0xff] %vm506_vm2, %v643_v50  ;;  %v487_v51 = vpop.f32.mrb[1].mxu1 }
 0x171   : > { %511 = vst.msk [vmem:[%s208_s28 + $0x20] sm:$0xff] %vm506_vm2, %v487_v51 }
 0x17b   : > { %v640_v52 = vpop.f32.mrb[2].mxu0 }
 0x17c   : > { %510 = vst.msk [vmem:[%s208_s28 + $0x18] sm:$0xff] %vm506_vm2, %v640_v52  ;;  %v477_v53 = vpop.f32.mrb[3].mxu0 }
 0x17d   : > { %509 = vst.msk [vmem:[%s208_s28 + $0x10] sm:$0xff] %vm506_vm2, %v477_v53 }
 0x17f   : > { %v646_v54 = vpop.f32.mrb[2].mxu1 }
 0x180   : > { %514 = vst.msk [vmem:[%s208_s28 + $0x38] sm:$0xff] %vm506_vm2, %v646_v54  ;;  %v497_v55 = vpop.f32.mrb[3].mxu1 }
 0x181   : > { %513 = vst.msk [vmem:[%s208_s28 + $0x30] sm:$0xff] %vm506_vm2, %v497_v55 }
 0x182 PF: > { %s13_s14 = sadd.s32 1, %s696_s14   ;;  %s910_s12 = smov %s692_s13 }
 0x183   : > { %p10_p5 = scmp.ge.s32.totalorder %s13_s14, 4   ;;  %s911_s13 = smov %s913_s15 }
 0x185   :  { %12 = sbr.rel (!%p10_p5) target bundleno = 2 (0x2), region = 62 }

</bundles_post_ra>
